<compile_context>
chip_gen: v6e
topology: v6e:2x2x1
jax: 0.10.0
libtpu: 0.0.40
codegen_flags: <defaults>
</compile_context>

<pallas_src>
import jax
import jax.numpy as jnp
from jax.experimental import pallas as pl
from jax.experimental.pallas import tpu as pltpu

NEURONS_PER_LAYER = 20
NUM_HIDDEN_LAYERS = 5
LAYERS = [3] + [NEURONS_PER_LAYER] * NUM_HIDDEN_LAYERS + [1]

F_IN = 8     # sublane-padded input feature count (x, z, t + 5 zero rows)
F_HID = 32   # sublane-padded hidden width (20 -> 32)
F_OUT = 8    # sublane-padded output feature count (result in row 0)


def _round_up(n, m):
    return (n + m - 1) // m * m


# ----------------------------- Pallas kernel --------------------------------
def pinn_kernel(a_ref,
                w0_ref, b0_ref,
                w1_ref, b1_ref,
                w2_ref, b2_ref,
                w3_ref, b3_ref,
                w5_ref, b5_ref,
                out_ref):
    """One batch tile of the MLP forward, feature-major (batch on lanes).

    a_ref: (F_IN, TN); w0: (F_HID, F_IN); w1..w3: (F_HID, F_HID);
    w5: (F_OUT, F_HID); b*: (F, 1) columns; out_ref: (F_OUT, TN).
    Each layer is h = tanh(W^T @ h + b); accumulation is always f32.
    """
    wdt = w0_ref.dtype                      # f32, or bf16 if use_bf16=True
    a = a_ref[...].astype(wdt)              # (F_IN, TN)

    # layer 0
    h = jnp.tanh(jnp.dot(w0_ref[...], a, preferred_element_type=jnp.float32)
                 + b0_ref[...])             # (F_HID, TN) f32

    # hidden layers 1..3 with tanh (layer index 4 is intentionally skipped,
    # matching the PyTorch forward's range(len(self.layers) - 2))
    for w_ref, b_ref in ((w1_ref, b1_ref), (w2_ref, b2_ref), (w3_ref, b3_ref)):
        h = jnp.tanh(jnp.dot(w_ref[...], h.astype(wdt),
                             preferred_element_type=jnp.float32) + b_ref[...])

    # final linear layer (self.layers[-1]), no activation; result in row 0
    out_ref[...] = (jnp.dot(w5_ref[...], h.astype(wdt),
                            preferred_element_type=jnp.float32)
                    + b5_ref[...]).astype(out_ref.dtype)


# ----------------------------- param prep ------------------------------------
def prepare_params(params, use_bf16=False):
    """One-time transpose + zero-pad of the layers actually used by the
    forward pass (indices 0, 1, 2, 3, 5) into feature-major form.

    Each torch-style (W:(in,out), b:(out,)) becomes (W^T padded to
    (out_pad, in_pad), b padded to (out_pad, 1)).  Zero padding is exact:
    zero weight rows/cols + zero bias -> tanh(0)=0 -> zero contribution.
    Call once; reuse the result for every forward.
    """
    wdt = jnp.bfloat16 if use_bf16 else jnp.float32

    def pad_t(wb, fout_pad, fin_pad):
        w, b = wb
        fin, fout = w.shape
        wt = jnp.zeros((fout_pad, fin_pad), jnp.float32).at[:fout, :fin].set(w.T)
        bt = jnp.zeros((fout_pad, 1), jnp.float32).at[:fout, 0].set(b)
        return wt.astype(wdt), bt           # bias stays f32 (added post-MXU)

    w0, b0 = pad_t(params[0], F_HID, F_IN)    # (32, 8),  (32, 1)
    w1, b1 = pad_t(params[1], F_HID, F_HID)   # (32, 32), (32, 1)
    w2, b2 = pad_t(params[2], F_HID, F_HID)
    w3, b3 = pad_t(params[3], F_HID, F_HID)
    # params[4] exists in the module but is never used by forward()
    w5, b5 = pad_t(params[5], F_OUT, F_HID)   # (8, 32),  (8, 1)
    return (w0, b0, w1, b1, w2, b2, w3, b3, w5, b5)


# ------------------------------ wrapper --------------------------------------
def pinn_forward(x, z, t, prepped, tn=16384):
    """x, z, t: (N, 1) float32.  prepped: output of prepare_params().
    Returns (N, 1) float32."""
    N = x.shape[0]
    N_lane = _round_up(N, 128)               # lane-aligned batch
    n_tiles = pl.cdiv(N_lane, tn)
    if n_tiles == 1 and N_lane >= 2048:
        n_tiles = 2                           # give both v7x TensorCores a tile
    TN = _round_up(pl.cdiv(N_lane, n_tiles), 128)   # balanced, lane-aligned tile
    N_pad = TN * n_tiles                      # tail waste <= 128 * n_tiles rows

    # Build the feature-major input slab (F_IN, N_pad): rows 0..2 = x, z, t.
    a = jnp.concatenate(
        (x.reshape(1, N), z.reshape(1, N), t.reshape(1, N)), axis=0
    ).astype(jnp.float32)                                        # (3, N)
    a = jnp.pad(a, ((0, F_IN - 3), (0, N_pad - N)))              # (F_IN, N_pad)

    batched = lambda i: (0, i)   # activation / output blocks march over batch
    const = lambda i: (0, 0)     # weights & biases stay resident in VMEM

    in_specs = [pl.BlockSpec((F_IN, TN), batched)]
    in_specs += [pl.BlockSpec(p.shape, const) for p in prepped]

    w_bytes = sum(int(p.size) * p.dtype.itemsize for p in prepped)
    cost = pl.CostEstimate(
        flops=2 * N_pad * (F_IN * F_HID + 3 * F_HID * F_HID + F_HID * F_OUT),
        transcendentals=4 * N_pad * F_HID,
        bytes_accessed=N_pad * (F_IN + F_OUT) * 4 + w_bytes,
    )

    out_pad = pl.pallas_call(
        pinn_kernel,
        out_shape=jax.ShapeDtypeStruct((F_OUT, N_pad), jnp.float32),
        grid=(n_tiles,),
        in_specs=in_specs,
        out_specs=pl.BlockSpec((F_OUT, TN), batched),
        compiler_params=pltpu.CompilerParams(
            dimension_semantics=("parallel",)),
        cost_estimate=cost,
    )(a, *prepped)
    return out_pad[0, :N].reshape(N, 1)                           # (N, 1)


# ----------------------------- parameter init --------------------------------
def init_params(key):
    """Xavier-normal weights (gain=1.0), zero biases, deterministic.
    Weight stored as (in, out) so y = a @ W + b (== torch's a @ weight.T + b)."""
    params = []
    for i in range(len(LAYERS) - 1):
        fan_in, fan_out = LAYERS[i], LAYERS[i + 1]
        key, sub = jax.random.split(key)
        std = (2.0 / (fan_in + fan_out)) ** 0.5
        w = std * jax.random.normal(sub, (fan_in, fan_out), jnp.float32)
        b = jnp.zeros((fan_out,), jnp.float32)
        params.append((w, b))
    return params


def pinn_ref(x, z, t, params):
    """Pure-JAX reference matching the PyTorch forward exactly."""
    a = jnp.concatenate((x, z, t), axis=1)
    for i in range(len(params) - 2):        # i = 0..3 ; layer 4 skipped
        a = jnp.tanh(a @ params[i][0] + params[i][1])
    w, b = params[-1]
    return a @ w + b


# --------------------------------- main ---------------------------------------
if __name__ == "__main__":
    key = jax.random.PRNGKey(0)
    params = init_params(key)
    prepped = prepare_params(params)        # f32 path (1e-5 accuracy contract)

    # small case (single tile)
    k1, k2, k3 = jax.random.split(jax.random.PRNGKey(0), 3)
    N = 8
    x = jax.random.normal(k1, (N, 1), jnp.float32)
    z = jax.random.normal(k2, (N, 1), jnp.float32)
    t = jax.random.normal(k3, (N, 1), jnp.float32)

    out = jax.block_until_ready(pinn_forward(x, z, t, prepped))
    ref = pinn_ref(x, z, t, params)
    assert out.shape == (N, 1)
    assert jnp.allclose(out, ref, atol=1e-5, rtol=1e-5)

    # non-tile-multiple batch to exercise the tiled grid + tail padding
    N2 = 300
    k4, k5, k6 = jax.random.split(jax.random.PRNGKey(1), 3)
    x2 = jax.random.normal(k4, (N2, 1), jnp.float32)
    z2 = jax.random.normal(k5, (N2, 1), jnp.float32)
    t2 = jax.random.normal(k6, (N2, 1), jnp.float32)
    out2 = jax.block_until_ready(pinn_forward(x2, z2, t2, prepped, tn=128))
    ref2 = pinn_ref(x2, z2, t2, params)
    assert out2.shape == (N2, 1)
    assert jnp.allclose(out2, ref2, atol=1e-5, rtol=1e-5)

    print("KERNEL_OK")
</pallas_src>

<mosaic_0001>
module attributes {stable_mosaic.version = 11 : i64} {
  func.func @pinn_kernel(%arg0: i32, %arg1: memref<8x128xf32, #tpu.memory_space<vmem>>, %arg2: memref<32x8xf32, #tpu.memory_space<vmem>>, %arg3: memref<32x1xf32, #tpu.memory_space<vmem>>, %arg4: memref<32x32xf32, #tpu.memory_space<vmem>>, %arg5: memref<32x1xf32, #tpu.memory_space<vmem>>, %arg6: memref<32x32xf32, #tpu.memory_space<vmem>>, %arg7: memref<32x1xf32, #tpu.memory_space<vmem>>, %arg8: memref<32x32xf32, #tpu.memory_space<vmem>>, %arg9: memref<32x1xf32, #tpu.memory_space<vmem>>, %arg10: memref<8x32xf32, #tpu.memory_space<vmem>>, %arg11: memref<8x1xf32, #tpu.memory_space<vmem>>, %arg12: memref<8x128xf32, #tpu.memory_space<vmem>>) attributes {dimension_semantics = [#tpu.dimension_semantics<parallel>], iteration_bounds = array<i64: 1>, scalar_prefetch = 0 : i64, scratch_operands = 0 : i64, tpu.core_type = #tpu.core_type<tc>, window_params = [{transform_indices = @transform_0, window_bounds = array<i64: 8, 128>}, {pipeline_mode = #tpu.pipeline_mode<synchronous>, transform_indices = @transform_1, window_bounds = array<i64: 32, 8>}, {pipeline_mode = #tpu.pipeline_mode<synchronous>, transform_indices = @transform_2, window_bounds = array<i64: 32, 1>}, {pipeline_mode = #tpu.pipeline_mode<synchronous>, transform_indices = @transform_3, window_bounds = array<i64: 32, 32>}, {pipeline_mode = #tpu.pipeline_mode<synchronous>, transform_indices = @transform_4, window_bounds = array<i64: 32, 1>}, {pipeline_mode = #tpu.pipeline_mode<synchronous>, transform_indices = @transform_5, window_bounds = array<i64: 32, 32>}, {pipeline_mode = #tpu.pipeline_mode<synchronous>, transform_indices = @transform_6, window_bounds = array<i64: 32, 1>}, {pipeline_mode = #tpu.pipeline_mode<synchronous>, transform_indices = @transform_7, window_bounds = array<i64: 32, 32>}, {pipeline_mode = #tpu.pipeline_mode<synchronous>, transform_indices = @transform_8, window_bounds = array<i64: 32, 1>}, {pipeline_mode = #tpu.pipeline_mode<synchronous>, transform_indices = @transform_9, window_bounds = array<i64: 8, 32>}, {pipeline_mode = #tpu.pipeline_mode<synchronous>, transform_indices = @transform_10, window_bounds = array<i64: 8, 1>}, {transform_indices = @transform_11, window_bounds = array<i64: 8, 128>}]} {
    %c0 = arith.constant 0 : index
    %c0_0 = arith.constant 0 : index
    %0 = vector.load %arg1[%c0, %c0_0] : memref<8x128xf32, #tpu.memory_space<vmem>>, vector<8x128xf32>
    %c0_1 = arith.constant 0 : index
    %c0_2 = arith.constant 0 : index
    %1 = vector.load %arg2[%c0_1, %c0_2] : memref<32x8xf32, #tpu.memory_space<vmem>>, vector<32x8xf32>
    %cst = arith.constant dense<0.000000e+00> : vector<32x128xf32>
    %2 = tpu.matmul %1, %0, %cst {dimension_numbers = #tpu.dot_dimension_numbers<[1], [0], [0], [1], [0, 0, 1, 1], [], []>} : vector<32x8xf32>, vector<8x128xf32>, vector<32x128xf32> -> vector<32x128xf32>
    %c0_3 = arith.constant 0 : index
    %c0_4 = arith.constant 0 : index
    %3 = vector.load %arg3[%c0_3, %c0_4] : memref<32x1xf32, #tpu.memory_space<vmem>>, vector<32x1xf32>
    %4 = vector.broadcast %3 : vector<32x1xf32> to vector<32x128xf32>
    %5 = arith.addf %2, %4 : vector<32x128xf32>
    %6 = math.tanh %5 : vector<32x128xf32>
    %c0_5 = arith.constant 0 : index
    %c0_6 = arith.constant 0 : index
    %7 = vector.load %arg4[%c0_5, %c0_6] : memref<32x32xf32, #tpu.memory_space<vmem>>, vector<32x32xf32>
    %cst_7 = arith.constant dense<0.000000e+00> : vector<32x128xf32>
    %8 = tpu.matmul %7, %6, %cst_7 {dimension_numbers = #tpu.dot_dimension_numbers<[1], [0], [0], [1], [0, 0, 1, 1], [], []>} : vector<32x32xf32>, vector<32x128xf32>, vector<32x128xf32> -> vector<32x128xf32>
    %c0_8 = arith.constant 0 : index
    %c0_9 = arith.constant 0 : index
    %9 = vector.load %arg5[%c0_8, %c0_9] : memref<32x1xf32, #tpu.memory_space<vmem>>, vector<32x1xf32>
    %10 = vector.broadcast %9 : vector<32x1xf32> to vector<32x128xf32>
    %11 = arith.addf %8, %10 : vector<32x128xf32>
    %12 = math.tanh %11 : vector<32x128xf32>
    %c0_10 = arith.constant 0 : index
    %c0_11 = arith.constant 0 : index
    %13 = vector.load %arg6[%c0_10, %c0_11] : memref<32x32xf32, #tpu.memory_space<vmem>>, vector<32x32xf32>
    %cst_12 = arith.constant dense<0.000000e+00> : vector<32x128xf32>
    %14 = tpu.matmul %13, %12, %cst_12 {dimension_numbers = #tpu.dot_dimension_numbers<[1], [0], [0], [1], [0, 0, 1, 1], [], []>} : vector<32x32xf32>, vector<32x128xf32>, vector<32x128xf32> -> vector<32x128xf32>
    %c0_13 = arith.constant 0 : index
    %c0_14 = arith.constant 0 : index
    %15 = vector.load %arg7[%c0_13, %c0_14] : memref<32x1xf32, #tpu.memory_space<vmem>>, vector<32x1xf32>
    %16 = vector.broadcast %15 : vector<32x1xf32> to vector<32x128xf32>
    %17 = arith.addf %14, %16 : vector<32x128xf32>
    %18 = math.tanh %17 : vector<32x128xf32>
    %c0_15 = arith.constant 0 : index
    %c0_16 = arith.constant 0 : index
    %19 = vector.load %arg8[%c0_15, %c0_16] : memref<32x32xf32, #tpu.memory_space<vmem>>, vector<32x32xf32>
    %cst_17 = arith.constant dense<0.000000e+00> : vector<32x128xf32>
    %20 = tpu.matmul %19, %18, %cst_17 {dimension_numbers = #tpu.dot_dimension_numbers<[1], [0], [0], [1], [0, 0, 1, 1], [], []>} : vector<32x32xf32>, vector<32x128xf32>, vector<32x128xf32> -> vector<32x128xf32>
    %c0_18 = arith.constant 0 : index
    %c0_19 = arith.constant 0 : index
    %21 = vector.load %arg9[%c0_18, %c0_19] : memref<32x1xf32, #tpu.memory_space<vmem>>, vector<32x1xf32>
    %22 = vector.broadcast %21 : vector<32x1xf32> to vector<32x128xf32>
    %23 = arith.addf %20, %22 : vector<32x128xf32>
    %24 = math.tanh %23 : vector<32x128xf32>
    %c0_20 = arith.constant 0 : index
    %c0_21 = arith.constant 0 : index
    %25 = vector.load %arg10[%c0_20, %c0_21] : memref<8x32xf32, #tpu.memory_space<vmem>>, vector<8x32xf32>
    %cst_22 = arith.constant dense<0.000000e+00> : vector<8x128xf32>
    %26 = tpu.matmul %25, %24, %cst_22 {dimension_numbers = #tpu.dot_dimension_numbers<[1], [0], [0], [1], [0, 0, 1, 1], [], []>} : vector<8x32xf32>, vector<32x128xf32>, vector<8x128xf32> -> vector<8x128xf32>
    %c0_23 = arith.constant 0 : index
    %c0_24 = arith.constant 0 : index
    %27 = vector.load %arg11[%c0_23, %c0_24] : memref<8x1xf32, #tpu.memory_space<vmem>>, vector<8x1xf32>
    %28 = vector.broadcast %27 : vector<8x1xf32> to vector<8x128xf32>
    %29 = arith.addf %26, %28 : vector<8x128xf32>
    %c0_25 = arith.constant 0 : index
    %c0_26 = arith.constant 0 : index
    %30 = vector.load %arg12[%c0_25, %c0_26] : memref<8x128xf32, #tpu.memory_space<vmem>>, vector<8x128xf32>
    tpu.vector_store %arg12[%c0_25, %c0_26], %29 {strides = array<i32>} : memref<8x128xf32, #tpu.memory_space<vmem>>, vector<8x128xf32>,
    return
  }
  func.func @transform_0(%arg0: i32) -> (i32, i32) {
    %c0_i32 = arith.constant 0 : i32
    %c0_i32_0 = arith.constant 0 : i32
    return %c0_i32, %arg0 : i32, i32
  }
  func.func @transform_1(%arg0: i32) -> (i32, i32) {
    %c0_i32 = arith.constant 0 : i32
    %c0_i32_0 = arith.constant 0 : i32
    %c0_i32_1 = arith.constant 0 : i32
    return %c0_i32, %c0_i32_0 : i32, i32
  }
  func.func @transform_2(%arg0: i32) -> (i32, i32) {
    %c0_i32 = arith.constant 0 : i32
    %c0_i32_0 = arith.constant 0 : i32
    %c0_i32_1 = arith.constant 0 : i32
    return %c0_i32, %c0_i32_0 : i32, i32
  }
  func.func @transform_3(%arg0: i32) -> (i32, i32) {
    %c0_i32 = arith.constant 0 : i32
    %c0_i32_0 = arith.constant 0 : i32
    %c0_i32_1 = arith.constant 0 : i32
    return %c0_i32, %c0_i32_0 : i32, i32
  }
  func.func @transform_4(%arg0: i32) -> (i32, i32) {
    %c0_i32 = arith.constant 0 : i32
    %c0_i32_0 = arith.constant 0 : i32
    %c0_i32_1 = arith.constant 0 : i32
    return %c0_i32, %c0_i32_0 : i32, i32
  }
  func.func @transform_5(%arg0: i32) -> (i32, i32) {
    %c0_i32 = arith.constant 0 : i32
    %c0_i32_0 = arith.constant 0 : i32
    %c0_i32_1 = arith.constant 0 : i32
    return %c0_i32, %c0_i32_0 : i32, i32
  }
  func.func @transform_6(%arg0: i32) -> (i32, i32) {
    %c0_i32 = arith.constant 0 : i32
    %c0_i32_0 = arith.constant 0 : i32
    %c0_i32_1 = arith.constant 0 : i32
    return %c0_i32, %c0_i32_0 : i32, i32
  }
  func.func @transform_7(%arg0: i32) -> (i32, i32) {
    %c0_i32 = arith.constant 0 : i32
    %c0_i32_0 = arith.constant 0 : i32
    %c0_i32_1 = arith.constant 0 : i32
    return %c0_i32, %c0_i32_0 : i32, i32
  }
  func.func @transform_8(%arg0: i32) -> (i32, i32) {
    %c0_i32 = arith.constant 0 : i32
    %c0_i32_0 = arith.constant 0 : i32
    %c0_i32_1 = arith.constant 0 : i32
    return %c0_i32, %c0_i32_0 : i32, i32
  }
  func.func @transform_9(%arg0: i32) -> (i32, i32) {
    %c0_i32 = arith.constant 0 : i32
    %c0_i32_0 = arith.constant 0 : i32
    %c0_i32_1 = arith.constant 0 : i32
    return %c0_i32, %c0_i32_0 : i32, i32
  }
  func.func @transform_10(%arg0: i32) -> (i32, i32) {
    %c0_i32 = arith.constant 0 : i32
    %c0_i32_0 = arith.constant 0 : i32
    %c0_i32_1 = arith.constant 0 : i32
    return %c0_i32, %c0_i32_0 : i32, i32
  }
  func.func @transform_11(%arg0: i32) -> (i32, i32) {
    %c0_i32 = arith.constant 0 : i32
    %c0_i32_0 = arith.constant 0 : i32
    return %c0_i32, %arg0 : i32, i32
  }
}

</mosaic_0001>

<bundles_post_ra>
// kernel: tpu_custom_call.1
= control target key start
LH: loop header
LB: loop body
LE: loop exit
PB: predicated region body
PF: predicated region fallthrough
CT: control target
= control target key end

     0   :  { %vm68_vm0 = vcmask 64512   ;;  %v825_v5 = vmov 0   ;;  %s1014_s0 = inlined_call_operand.vmem [shape: f32[8,128], index: 0, kind: input, shape index: {}]   ;;  %s1015_s1 = inlined_call_operand.vmem [shape: f32[32,8], index: 1, kind: input, shape index: {}]   ;;  %s1016_s2 = inlined_call_operand.vmem [shape: f32[32,1], index: 2, kind: input, shape index: {}]   ;;  %s1017_s3 = inlined_call_operand.vmem [shape: f32[32,32], index: 3, kind: input, shape index: {}]   ;;  %s1018_s4 = inlined_call_operand.vmem [shape: f32[32,1], index: 4, kind: input, shape index: {}]   ;;  %s1019_s5 = inlined_call_operand.vmem [shape: f32[32,32], index: 5, kind: input, shape index: {}]   ;;  %s1020_s6 = inlined_call_operand.vmem [shape: f32[32,1], index: 6, kind: input, shape index: {}]   ;;  %s1021_s7 = inlined_call_operand.vmem [shape: f32[32,32], index: 7, kind: input, shape index: {}]   ;;  %s1022_s8 = inlined_call_operand.vmem [shape: f32[32,1], index: 8, kind: input, shape index: {}]   ;;  %s1023_s9 = inlined_call_operand.vmem [shape: f32[8,32], index: 9, kind: input, shape index: {}]   ;;  %s1024_s10 = inlined_call_operand.vmem [shape: f32[8,1], index: 10, kind: input, shape index: {}]   ;;  %s1025_s11 = inlined_call_operand.hbm [shape: f32[8,128], index: 11, kind: output, shape index: {}]  }
   0x1   :  { %v39_v0 = vld [vmem:[%s1014_s0] sm:$0xff]  ;;  %v41_v2 = vld [vmem:[%s1015_s1 + $0x8] sm:$0xff]  ;;  %v42_v3 = vld [vmem:[%s1015_s1 + $0x10] sm:$0xff]  ;;  %769 = vset.pattern.permute.xlu0 %v825_v5  ;;  %770 = vset.pattern.permute.xlu1 %v825_v5 }
   0x2   :  { %v40_v1 = vld [vmem:[%s1015_s1] sm:$0xff]  ;;  %704 = vmatprep.subr.mxu0 %v39_v0  ;;  %v47_v4 = vld [vmem:[%s1016_s2 + $0x18] sm:$0xff]  ;;  %v45_v6 = vld [vmem:[%s1016_s2 + $0x8] sm:$0xff] }
   0x3   :  { %706 = vmatprep.mubr.msk.f32.mxu0 %vm68_vm0, %v40_v1  ;;  %705 = vmatpush3.msra.mxu0 %v39_v0  ;;  %v43_v7 = vld [vmem:[%s1015_s1 + $0x18] sm:$0xff]  ;;  %v46_v8 = vld [vmem:[%s1016_s2 + $0x10] sm:$0xff]  ;;  %v44_v9 = vld [vmem:[%s1016_s2] sm:$0xff] }
   0x4   :  { %707 = vmatmul.mubr.msk.f32.vlgmr.msra.gmra.mxu0 %vm68_vm0, %v41_v2  ;;  %65 = vperm.xlu0 %769, %v47_v4  }
   0x5   :  { %709 = vmatprep.mubr.msk.f32.mxu0 %vm68_vm0, %v42_v3  ;;  %55 = vperm.xlu1 %770, %v45_v6  }
   0x8   :  { %710 = vmatmul.mubr.msk.f32.gmra.mxu0 %vm68_vm0, %v43_v7  ;;  %60 = vperm.xlu0 %769, %v46_v8  }
   0x9   :  { %16 = vsyncpa [#allocation3], 0  ;;  %v177_v10 = vld [vmem:[%s1018_s4 + $0x18] sm:$0xff]  ;;  %50 = vperm.xlu1 %770, %v44_v9   ;;  %v176_v11 = vld [vmem:[%s1018_s4 + $0x10] sm:$0xff]  ;;  %vm198_vm1 = vcmask 261120   ;;  %vm827_vm2 = vmmov 0  }
   0xa   :  { %v175_v12 = vld [vmem:[%s1018_s4 + $0x8] sm:$0xff]  ;;  %v174_v13 = vld [vmem:[%s1018_s4] sm:$0xff]  ;;  %v307_v14 = vld [vmem:[%s1020_s6 + $0x18] sm:$0xff]  ;;  %s828_s15 = smov [#allocation2]  }
   0xb   :  { %v306_v15 = vld [vmem:[%s1020_s6 + $0x10] sm:$0xff]  ;;  %v305_v16 = vld [vmem:[%s1020_s6 + $0x8] sm:$0xff]  ;;  %v304_v17 = vld [vmem:[%s1020_s6] sm:$0xff]  ;;  %s645_s6 = sshll.u32 %s828_s15, 4  ;;  %s646_s6 = int_to_ptr.vmem [resolvable:$true] %s645_s6 }
   0xc   :  { %195 = vperm.xlu0 %769, %v177_v10   ;;  %v436_v18 = vld [vmem:[%s1022_s8 + $0x18] sm:$0xff]  ;;  %v435_v19 = vld [vmem:[%s1022_s8 + $0x10] sm:$0xff]  ;;  %v434_v20 = vld [vmem:[%s1022_s8 + $0x8] sm:$0xff]  ;;  %s803_s16 = scalar_lea.vmem %s646_s6, 128  ;;  %p808_p1 = scmp.lt.s32.totalorder %s646_s6, %s646_s6 }
   0xd   :  { %190 = vperm.xlu1 %770, %v176_v11   ;;  %v433_v21 = vld [vmem:[%s1022_s8] sm:$0xff]  ;;  %v171_v40 = vld [vmem:[%s1017_s3 + $0x8] sm:$0xff]  ;;  %v172_v41 = vld [vmem:[%s1017_s3 + $0x10] sm:$0xff]  ;;  %p804_p0 = scmp.ne.s32.totalorder %s646_s6, %s803_s16  ;;  %p809_p2 = scmp.lt.s32.totalorder %s803_s16, %s803_s16 }
   0xe   :  { %v559_v22 = vld [vmem:[%s1024_s10] sm:$0xff]  ;;  %v173_v42 = vld [vmem:[%s1017_s3 + $0x18] sm:$0xff]  ;;  %v301_v60 = vld [vmem:[%s1019_s5 + $0x8] sm:$0xff] }
   0xf   :  { %v170_v23 = vld [vmem:[%s1017_s3] sm:$0xff]  ;;  %v302_v61 = vld [vmem:[%s1019_s5 + $0x10] sm:$0xff]  ;;  %v303_v62 = vld [vmem:[%s1019_s5 + $0x18] sm:$0xff]  ;;  %p810_p3 = por %p809_p2, %p808_p1 }
  0x10   :  { %185 = vperm.xlu0 %769, %v175_v12   ;;  %720 = vmatprep.mubr.msk.f32.mxu1 %vm198_vm1, %v170_v23  ;;  %v300_v43 = vld [vmem:[%s1019_s5] sm:$0xff] }
  0x11   :  { %180 = vperm.xlu1 %770, %v174_v13   ;;  %734 = vmatprep.mubr.msk.f32.mxu0 %vm198_vm1, %v300_v43  ;;  %v429_v63 = vld [vmem:[%s1021_s7] sm:$0xff]  ;;  %p811_p4 = pnand %p810_p3, %p804_p0 }
  0x14   :  { %325 = vperm.xlu0 %769, %v307_v14  }
  0x15   :  { %320 = vperm.xlu1 %770, %v306_v15  }
  0x18   :  { %315 = vperm.xlu0 %769, %v305_v16   ;;  %v430_v16 = vld [vmem:[%s1021_s7 + $0x8] sm:$0xff] }
  0x19   :  { %310 = vperm.xlu1 %770, %v304_v17   ;;  %v431_v17 = vld [vmem:[%s1021_s7 + $0x10] sm:$0xff] }
  0x1c   :  { %454 = vperm.xlu0 %769, %v436_v18   ;;  %v432_v18 = vld [vmem:[%s1021_s7 + $0x18] sm:$0xff] }
  0x1d   :  { %449 = vperm.xlu1 %770, %v435_v19   ;;  %v826_v19 = vmov 0.0  }
  0x20   :  { %444 = vperm.xlu0 %769, %v434_v20  }
  0x21   :  { %439 = vperm.xlu1 %770, %v433_v21  }
  0x24   :  { %562 = vperm.xlu0 %769, %v559_v22  }
  0x7f   :  { %v66_v24 = vpop.permute.xlu0 %65 }
  0x80   :  { %v56_v26 = vpop.permute.xlu1 %55 }
  0x83   :  { %v61_v30 = vpop.permute.xlu0 %60 }
  0x84   :  { %v51_v34 = vpop.permute.xlu1 %50 }
  0x87   :  { %v196_v44 = vpop.permute.xlu0 %195 }
  0x88   :  { %v191_v46 = vpop.permute.xlu1 %190 }
  0x8b   :  { %v186_v50 = vpop.permute.xlu0 %185 }
  0x8c   :  { %v181_v54 = vpop.permute.xlu1 %180 }
  0x8f   :  { %v326_v0 = vpop.permute.xlu0 %325 }
  0x90   :  { %v321_v2 = vpop.permute.xlu1 %320 }
  0x93   :  { %v316_v6 = vpop.permute.xlu0 %315 }
  0x94   :  { %v311_v10 = vpop.permute.xlu1 %310 }
  0x97   :  { %v455_v20 = vpop.permute.xlu0 %454 }
  0x98   :  { %v450_v22 = vpop.permute.xlu1 %449 }
  0xc4   :  { %v708_v25 = vpop.f32.mrf.mxu0 }
  0xc5   :  { %v153_v32 = vadd.f32 %v708_v25, %v56_v26  ;;  %v445_v26 = vpop.permute.xlu0 %444 }
  0xc6   :  { %v147_v27 = vpop.f32.mrf.mxu0 }
  0xc7   :  { %v148_v35 = vadd.f32 %v147_v27, %v51_v34 }
  0xc8   :  { %v711_v28 = vpop.f32.mrf.mxu0 }
  0xc9   :  { %v163_v29 = vadd.f32 %v711_v28, %v66_v24 }
  0xca   :  { %v157_v31 = vpop.f32.mrf.mxu0 }
  0xcb   :  { %771 = vtanh.f32 %v163_v29  ;;  %v158_v33 = vadd.f32 %v157_v31, %v61_v30  ;;  %v440_v30 = vpop.permute.xlu1 %439 }
  0xcd   :  { %773 = vtanh.f32 %v158_v33 }
  0xce   :  { %775 = vtanh.f32 %v153_v32 }
  0xcf   :  { %777 = vtanh.f32 %v148_v35  ;;  %v558_v35 = vld [vmem:[%s1023_s9] sm:$0xff] }
  0xd8   :  { %v772_v36 = vpop.eup %771 }
  0xd9   :  { %712 = vmatprep.subr.mxu1 %v772_v36 }
  0xda   :  { %v774_v37 = vpop.eup %773  ;;  %713 = vmatpush3.msra.mxu1 %v772_v36 }
  0xdb   :  { %714 = vmatprep.subr.mxu1 %v774_v37  ;;  %v776_v38 = vpop.eup %775 }
  0xdc   :  { %715 = vmatpush3.msra.mxu1 %v774_v37  ;;  %v778_v39 = vpop.eup %777  ;;  %v563_v37 = vpop.permute.xlu0 %562 }
  0xdd   :  { %716 = vmatprep.subr.mxu1 %v776_v38 }
  0xde   :  { %717 = vmatpush3.msra.mxu1 %v776_v38 }
  0xdf   :  { %718 = vmatprep.subr.mxu1 %v778_v39 }
  0xe0   :  { %719 = vmatpush3.msra.mxu1 %v778_v39 }
  0xe1   :  { %721 = vmatmul.mubr.msk.f32.vlgmr.msra.gmra.mxu1 %vm198_vm1, %v171_v40 }
  0xe2   :  { %723 = vmatprep.mubr.msk.f32.mxu1 %vm198_vm1, %v172_v41 }
  0xe5   :  { %724 = vmatmul.mubr.msk.f32.gmra.mxu1 %vm198_vm1, %v173_v42 }
  0xe6   :  { %748 = vmatprep.mubr.msk.f32.mxu1 %vm198_vm1, %v429_v63 }
 0x1a1   :  { %v722_v45 = vpop.f32.mrf.mxu1 }
 0x1a2   :  { %v283_v52 = vadd.f32 %v722_v45, %v186_v50 }
 0x1a3   :  { %v277_v47 = vpop.f32.mrf.mxu1 }
 0x1a4   :  { %v278_v55 = vadd.f32 %v277_v47, %v181_v54 }
 0x1a5   :  { %v725_v48 = vpop.f32.mrf.mxu1 }
 0x1a6   :  { %v293_v49 = vadd.f32 %v725_v48, %v196_v44 }
 0x1a7   :  { %v287_v51 = vpop.f32.mrf.mxu1 }
 0x1a8   :  { %779 = vtanh.f32 %v293_v49  ;;  %v288_v53 = vadd.f32 %v287_v51, %v191_v46 }
 0x1aa   :  { %781 = vtanh.f32 %v288_v53 }
 0x1ab   :  { %783 = vtanh.f32 %v283_v52 }
 0x1ac   :  { %785 = vtanh.f32 %v278_v55 }
 0x1b5   :  { %v780_v56 = vpop.eup %779 }
 0x1b6   :  { %726 = vmatprep.subr.mxu0 %v780_v56 }
 0x1b7   :  { %v782_v57 = vpop.eup %781  ;;  %727 = vmatpush3.msra.mxu0 %v780_v56 }
 0x1b8   :  { %728 = vmatprep.subr.mxu0 %v782_v57  ;;  %v784_v58 = vpop.eup %783 }
 0x1b9   :  { %729 = vmatpush3.msra.mxu0 %v782_v57  ;;  %v786_v59 = vpop.eup %785 }
 0x1ba   :  { %730 = vmatprep.subr.mxu0 %v784_v58 }
 0x1bb   :  { %731 = vmatpush3.msra.mxu0 %v784_v58 }
 0x1bc   :  { %732 = vmatprep.subr.mxu0 %v786_v59 }
 0x1bd   :  { %733 = vmatpush3.msra.mxu0 %v786_v59 }
 0x1be   :  { %735 = vmatmul.mubr.msk.f32.vlgmr.msra.gmra.mxu0 %vm198_vm1, %v301_v60  ;;  %754 = vmatprep.subr.mxu0 %v826_v19 }
 0x1bf   :  { %737 = vmatprep.mubr.msk.f32.mxu0 %vm198_vm1, %v302_v61 }
 0x1c2   :  { %738 = vmatmul.mubr.msk.f32.gmra.mxu0 %vm198_vm1, %v303_v62 }
 0x1c3   :  { %762 = vmatprep.mubr.msk.f32.mxu0 %vm827_vm2, %v826_v19 }
 0x27e   :  { %v736_v1 = vpop.f32.mrf.mxu0 }
 0x27f   :  { %v412_v8 = vadd.f32 %v736_v1, %v316_v6 }
 0x280   :  { %v406_v3 = vpop.f32.mrf.mxu0 }
 0x281   :  { %v407_v11 = vadd.f32 %v406_v3, %v311_v10 }
 0x282   :  { %v739_v4 = vpop.f32.mrf.mxu0 }
 0x283   :  { %v422_v5 = vadd.f32 %v739_v4, %v326_v0 }
 0x284   :  { %v416_v7 = vpop.f32.mrf.mxu0 }
 0x285   :  { %787 = vtanh.f32 %v422_v5  ;;  %v417_v9 = vadd.f32 %v416_v7, %v321_v2 }
 0x287   :  { %789 = vtanh.f32 %v417_v9 }
 0x288   :  { %791 = vtanh.f32 %v412_v8 }
 0x289   :  { %793 = vtanh.f32 %v407_v11 }
 0x292   :  { %v788_v12 = vpop.eup %787 }
 0x293   :  { %740 = vmatprep.subr.mxu1 %v788_v12 }
 0x294   :  { %v790_v13 = vpop.eup %789  ;;  %741 = vmatpush3.msra.mxu1 %v788_v12 }
 0x295   :  { %742 = vmatprep.subr.mxu1 %v790_v13  ;;  %v792_v14 = vpop.eup %791 }
 0x296   :  { %743 = vmatpush3.msra.mxu1 %v790_v13  ;;  %v794_v15 = vpop.eup %793 }
 0x297   :  { %744 = vmatprep.subr.mxu1 %v792_v14 }
 0x298   :  { %745 = vmatpush3.msra.mxu1 %v792_v14 }
 0x299   :  { %746 = vmatprep.subr.mxu1 %v794_v15 }
 0x29a   :  { %747 = vmatpush3.msra.mxu1 %v794_v15 }
 0x29b   :  { %749 = vmatmul.mubr.msk.f32.vlgmr.msra.gmra.mxu1 %vm198_vm1, %v430_v16 }
 0x29c   :  { %751 = vmatprep.mubr.msk.f32.mxu1 %vm198_vm1, %v431_v17 }
 0x29f   :  { %752 = vmatmul.mubr.msk.f32.gmra.mxu1 %vm198_vm1, %v432_v18 }
 0x35b   :  { %v750_v21 = vpop.f32.mrf.mxu1 }
 0x35c   :  { %v541_v28 = vadd.f32 %v750_v21, %v445_v26 }
 0x35d   :  { %v535_v23 = vpop.f32.mrf.mxu1 }
 0x35e   :  { %v536_v31 = vadd.f32 %v535_v23, %v440_v30 }
 0x35f   :  { %v753_v24 = vpop.f32.mrf.mxu1 }
 0x360   :  { %v551_v25 = vadd.f32 %v753_v24, %v455_v20 }
 0x361   :  { %v545_v27 = vpop.f32.mrf.mxu1 }
 0x362   :  { %795 = vtanh.f32 %v551_v25  ;;  %v546_v29 = vadd.f32 %v545_v27, %v450_v22 }
 0x364   :  { %797 = vtanh.f32 %v546_v29 }
 0x365   :  { %799 = vtanh.f32 %v541_v28 }
 0x366   :  { %801 = vtanh.f32 %v536_v31 }
 0x36f   :  { %v796_v32 = vpop.eup %795 }
 0x370   :  { %755 = vmatpush3.msra.mxu0 %v796_v32 }
 0x371   :  { %v798_v33 = vpop.eup %797  ;;  %756 = vmatprep.subr.mxu0 %v826_v19 }
 0x372   :  { %757 = vmatpush3.msra.mxu0 %v798_v33  ;;  %v800_v34 = vpop.eup %799 }
 0x373   :  { %758 = vmatprep.subr.mxu0 %v826_v19  ;;  %v802_v36 = vpop.eup %801 }
 0x374   :  { %759 = vmatpush3.msra.mxu0 %v800_v34 }
 0x375   :  { %760 = vmatprep.subr.mxu0 %v826_v19 }
 0x376   :  { %761 = vmatpush3.msra.mxu0 %v802_v36 }
 0x377   :  { %763 = vmatmul.mubr.msk.f32.vlgmr.msra.gmra.mxu0 %vm198_vm1, %v558_v35 }
 0x437   :  { %v634_v38 = vpop.f32.mrf.mxu0 }
 0x438   :  { %v635_v39 = vadd.f32 %v634_v38, %v563_v37 }
 0x439   :  { %v764_v40 = vpop.f32.mrf.mxu0 }
 0x43a   :  { %638 = vst [vmem:[#allocation2] sm:$0xff] %v635_v39 }
 0x43b   :  { %814 = shalt.err (!%p811_p4)
}
 0x43c   :  { %648 = dma.vmem_to_hbm [thread:$0]  %s646_s6, 128, %s1025_s11, [#allocation3]  }
 0x43d   :  { %823 = dma.done.wait [#allocation3], 128  }
 0x43e   :  { %824 = vsyncadd [#allocation3], 4294967168 }
 0x43f   :  { %652 = vsyncpa [#allocation3], 1 }

</bundles_post_ra>
